<compile_context>
chip_gen: v7x
topology: tpu7x:2x2x1
jax: 0.10.0
libtpu: 0.0.40
codegen_flags: <defaults>
</compile_context>

<pallas_src>
import functools

import jax
import jax.numpy as jnp
from jax import lax
from jax.experimental import pallas as pl
from jax.experimental.pallas import tpu as pltpu

BN_EPS = 1e-5


# ----------------------------------------------------------------------------
# Fused Pallas kernel: whole forward pass for one batch block.
# ----------------------------------------------------------------------------
def _tactile_fused_kernel(xp_ref, w0_ref, b0_ref, w1_ref, b1_ref, w2_ref, b2_ref,
                          w3_ref, b3_ref, w4_ref, b4_ref,
                          out_ref,
                          pad0_ref, pad1_ref, feat_ref,
                          *, bb, L1, L2, L3, k1, k2, p1, p2):
    f32 = jnp.float32
    cdt = w0_ref.dtype                       # matmul operand dtype (bf16 or f32)
    gr = w0_ref.shape[1]                     # xyz out channels (8)
    c2 = w1_ref.shape[1]                     # conv1 out channels (32)
    c3 = w2_ref.shape[1]                     # conv2 out channels (64)
    nh = w3_ref.shape[2]                     # fc1 width (128)

    # Zero only the conv pad rows (interiors are fully rewritten below).  Done
    # unconditionally each grid step (4 tiny stores) so correctness does not
    # depend on which TensorCore executed grid step 0.
    pad0_ref[:, 0:p1, :] = jnp.zeros((bb, p1, gr), pad0_ref.dtype)
    pad0_ref[:, p1 + L1:p1 + L1 + p1, :] = jnp.zeros((bb, p1, gr), pad0_ref.dtype)
    pad1_ref[:, 0:p2, :] = jnp.zeros((bb, p2, c2), pad1_ref.dtype)
    pad1_ref[:, p2 + L2:p2 + L2 + p2, :] = jnp.zeros((bb, p2, c2), pad1_ref.dtype)

    # ---- xyz_conv (stride-3 patch matmul, batch folded into M) + BN + ReLU ---
    h0 = jnp.dot(xp_ref[...], w0_ref[...], preferred_element_type=f32) + b0_ref[...]
    h0 = jnp.maximum(h0, 0.0)                                    # (bb*L1, gr) f32
    pad0_ref[:, p1:p1 + L1, :] = h0.reshape(bb, L1, gr).astype(cdt)

    # ---- convN + BN + ReLU + MaxPool1d(2):
    #      taps folded into K (im2col slab built from strided scratch reads),
    #      even/odd pooling rows stacked along M -> ONE MXU push per conv. ----
    def pooled_conv(pad_ref, w_ref, b_ref, k, l_out):
        cin = pad_ref.shape[-1]

        def slab(par):                       # par=0: even output rows, 1: odd
            taps = [pad_ref[:, pl.ds(t + par, l_out, stride=2), :]
                    for t in range(k)]
            return jnp.concatenate(taps, axis=-1)        # (bb, l_out, k*cin)

        both = jnp.concatenate([slab(0), slab(1)], axis=0)   # (2*bb, l_out, k*cin)
        y = jnp.dot(both.reshape(2 * bb * l_out, k * cin), w_ref[...],
                    preferred_element_type=f32)               # (2*bb*l_out, cout)
        ye, yo = y[:bb * l_out], y[bb * l_out:]
        # max commutes with the monotone +bias / ReLU epilogue.
        return jnp.maximum(jnp.maximum(ye, yo) + b_ref[...], 0.0)  # (bb*l_out, cout)

    h1 = pooled_conv(pad0_ref, w1_ref, b1_ref, k1, L2)            # (bb*L2, c2)
    pad1_ref[:, p2:p2 + L2, :] = h1.reshape(bb, L2, c2).astype(cdt)

    h2 = pooled_conv(pad1_ref, w2_ref, b2_ref, k2, L3)            # (bb*L3, c3)
    feat_ref[...] = h2.astype(cdt)                                # one lane-dense store

    # ---- fc1 + ReLU as an accumulated dot over the position axis (no flatten
    #      scatter; the PyTorch channel-major flatten order is absorbed into
    #      the host layout of w3).  Dropout(0.3) is identity at inference. ----
    acc = jnp.zeros((bb, nh), f32)
    for l in range(L3):
        piece = feat_ref[pl.ds(l, bb, stride=L3), :]              # rows b*L3 + l
        acc = acc + jnp.dot(piece, w3_ref[l], preferred_element_type=f32)
    z1 = jnp.maximum(acc + b3_ref[...], 0.0).astype(cdt)          # (bb, nh)

    # ---- fc2 (classes padded to a lane-dense width on the host) -------------
    out_ref[...] = jnp.dot(z1, w4_ref[...], preferred_element_type=f32) + b4_ref[...]


# ----------------------------------------------------------------------------
# Host-side wrapper: weight folding + one pallas_call.
# ----------------------------------------------------------------------------
def bn_fold(gamma, beta, mean, var, eps=BN_EPS):
    scale = gamma / jnp.sqrt(var + eps)
    shift = beta - mean * scale
    return scale, shift


def _default_batch_block(B):
    # v5e/v6e: one TensorCore -> single grid step (extra steps are pure serial
    # overhead).  v7x: two TensorCores -> split the batch in two when the
    # halves stay sublane-aligned so dimension_semantics=("parallel",) helps.
    try:
        kind = jax.devices()[0].device_kind.lower()
    except Exception:
        kind = ""
    if "v7" in kind and B % 2 == 0 and (B // 2) % 8 == 0:
        return B // 2
    return B


def tactile_cnn_forward(x_ncl, p, *, compute_dtype=jnp.bfloat16, batch_block=None):
    if x_ncl.ndim == 2:                      # mirror x.dim()==2 -> unsqueeze(0)
        x_ncl = x_ncl[None]
    x_ncl = x_ncl.astype(jnp.float32)
    B, Cin, L = x_ncl.shape

    gr = p["xyz_w"].shape[0]                 # xyz_grouped (8)
    ks0 = p["xyz_w"].shape[2]                # 3 (== stride)
    c2 = p["c1_w"].shape[0]                  # 32
    k1 = p["c1_w"].shape[2]                  # 5
    c3 = p["c2_w"].shape[0]                  # 64
    k2 = p["c2_w"].shape[2]                  # 3
    p1 = (k1 - 1) // 2                       # 2
    p2 = (k2 - 1) // 2                       # 1
    nh = p["fc1_w"].shape[0]                 # 128
    ncls = p["fc2_b"].shape[0]
    ncls_pad = ((ncls + 127) // 128) * 128   # lane-dense output width

    L1 = (L - ks0) // ks0 + 1
    L2 = L1 // 2
    L3 = L2 // 2
    flat = c3 * L3
    assert p["fc1_w"].shape[1] == flat, "fc1 in-features must match flatten size"

    f32 = jnp.float32
    cdt = compute_dtype

    # ---- one-time host-side weight folding / relayout (all tiny) -------------
    s0, sh0 = bn_fold(p["xyz_gamma"], p["xyz_beta"], p["xyz_mean"], p["xyz_var"])
    w0 = (p["xyz_w"].reshape(gr, Cin * ks0).T * s0[None, :]).astype(cdt)   # (Cin*3, gr)
    b0 = (p["xyz_b"] * s0 + sh0).reshape(1, gr).astype(f32)

    s1, sh1 = bn_fold(p["bn1_gamma"], p["bn1_beta"], p["bn1_mean"], p["bn1_var"])
    w1 = (jnp.transpose(p["c1_w"], (2, 1, 0)) * s1[None, None, :]
          ).reshape(k1 * gr, c2).astype(cdt)                               # (k1*gr, c2)
    b1 = (p["c1_b"] * s1 + sh1).reshape(1, c2).astype(f32)

    s2, sh2 = bn_fold(p["bn2_gamma"], p["bn2_beta"], p["bn2_mean"], p["bn2_var"])
    w2 = (jnp.transpose(p["c2_w"], (2, 1, 0)) * s2[None, None, :]
          ).reshape(k2 * c2, c3).astype(cdt)                               # (k2*c2, c3)
    b2 = (p["c2_b"] * s2 + sh2).reshape(1, c3).astype(f32)

    # fc1: absorb PyTorch's channel-major flatten (f = c*L3 + l) into (L3, c3, nh).
    w3 = p["fc1_w"].reshape(nh, c3, L3).transpose(2, 1, 0).astype(cdt)     # (L3, c3, nh)
    b3 = p["fc1_b"].reshape(1, nh).astype(f32)

    # fc2: zero-pad the class dim to a lane-friendly width; sliced back below.
    w4 = jnp.zeros((nh, ncls_pad), f32).at[:, :ncls].set(p["fc2_w"].T).astype(cdt)
    b4 = jnp.zeros((1, ncls_pad), f32).at[0, :ncls].set(p["fc2_b"])

    # ---- input patchify: stride == kernel, so im2col is a pure reshape -------
    xp = (x_ncl[:, :, :ks0 * L1]
          .reshape(B, Cin, L1, ks0)
          .transpose(0, 2, 1, 3)
          .reshape(B * L1, Cin * ks0)
          .astype(cdt))

    bb = _default_batch_block(B) if batch_block is None else batch_block
    assert B % bb == 0, "batch_block must divide the batch size"
    grid = (B // bb,)

    def full(a):
        return pl.BlockSpec(a.shape, lambda i, n=a.ndim: (0,) * n)

    kern = functools.partial(_tactile_fused_kernel, bb=bb, L1=L1, L2=L2, L3=L3,
                             k1=k1, k2=k2, p1=p1, p2=p2)

    flops = 2 * B * (L1 * (Cin * ks0) * gr + L1 * (k1 * gr) * c2
                     + L2 * (k2 * c2) * c3 + flat * nh + nh * ncls_pad)
    bytes_accessed = int(xp.size) * xp.dtype.itemsize + B * ncls_pad * 4
    for a in (w0, b0, w1, b1, w2, b2, w3, b3, w4, b4):
        bytes_accessed += int(a.size) * a.dtype.itemsize

    out = pl.pallas_call(
        kern,
        out_shape=jax.ShapeDtypeStruct((B, ncls_pad), f32),
        grid_spec=pltpu.PrefetchScalarGridSpec(
            num_scalar_prefetch=0,
            grid=grid,
            in_specs=[
                pl.BlockSpec((bb * L1, Cin * ks0), lambda i: (i, 0)),
                full(w0), full(b0), full(w1), full(b1), full(w2), full(b2),
                full(w3), full(b3), full(w4), full(b4),
            ],
            out_specs=pl.BlockSpec((bb, ncls_pad), lambda i: (i, 0)),
            scratch_shapes=[
                pltpu.VMEM((bb, L1 + 2 * p1, gr), cdt),   # zero-padded xyz output
                pltpu.VMEM((bb, L2 + 2 * p2, c2), cdt),   # zero-padded pooled conv1
                pltpu.VMEM((bb * L3, c3), cdt),           # pooled conv2 features
            ]),
        compiler_params=pltpu.CompilerParams(
            dimension_semantics=("parallel",)),
        cost_estimate=pl.CostEstimate(flops=int(flops), transcendentals=0,
                                      bytes_accessed=int(bytes_accessed)),
    )(xp, w0, b0, w1, b1, w2, b2, w3, b3, w4, b4)

    return out[:, :ncls]


# ----------------------------------------------------------------------------
# Pure-JAX reference (PyTorch semantics, f32) for correctness checking.
# ----------------------------------------------------------------------------
def ref_forward(x_ncl, p):
    if x_ncl.ndim == 2:
        x_ncl = x_ncl[None]
    x = x_ncl.astype(jnp.float32)

    def conv1d(x, w, b, stride, pad):
        y = lax.conv_general_dilated(
            x, w, window_strides=(stride,), padding=[(pad, pad)],
            dimension_numbers=("NCH", "OIH", "NCH"))
        return y + b[None, :, None]

    def bn(x, g, bt, m, v):
        s = g / jnp.sqrt(v + BN_EPS)
        return x * s[None, :, None] + (bt - m * s)[None, :, None]

    def pool(x):
        B, C, L = x.shape
        x = x[:, :, : 2 * (L // 2)]
        return jnp.max(x.reshape(B, C, L // 2, 2), axis=-1)

    x = jax.nn.relu(bn(conv1d(x, p["xyz_w"], p["xyz_b"], 3, 0),
                       p["xyz_gamma"], p["xyz_beta"], p["xyz_mean"], p["xyz_var"]))
    x = pool(jax.nn.relu(bn(conv1d(x, p["c1_w"], p["c1_b"], 1, 2),
                            p["bn1_gamma"], p["bn1_beta"], p["bn1_mean"], p["bn1_var"])))
    x = pool(jax.nn.relu(bn(conv1d(x, p["c2_w"], p["c2_b"], 1, 1),
                            p["bn2_gamma"], p["bn2_beta"], p["bn2_mean"], p["bn2_var"])))
    x = x.reshape(x.shape[0], -1)
    x = jax.nn.relu(x @ p["fc1_w"].T + p["fc1_b"])
    x = x @ p["fc2_w"].T + p["fc2_b"]
    return x


# ----------------------------------------------------------------------------
# Deterministic parameter init + run.
# ----------------------------------------------------------------------------
def make_params(key, num_features=24, num_classes=10, flat_dim=256):
    grouped = num_features // 3
    ks = jax.random.split(key, 24)

    def nrm(k, shape, s=0.1):
        return (jax.random.normal(k, shape) * s).astype(jnp.float32)

    p = {}
    # xyz_conv: Conv1d(24 -> 8, k=3, stride=3)
    p["xyz_w"] = nrm(ks[0], (grouped, num_features, 3))
    p["xyz_b"] = nrm(ks[1], (grouped,))
    p["xyz_gamma"] = 1.0 + nrm(ks[2], (grouped,))
    p["xyz_beta"] = nrm(ks[3], (grouped,))
    p["xyz_mean"] = nrm(ks[4], (grouped,))
    p["xyz_var"] = 1.0 + jnp.abs(nrm(ks[5], (grouped,)))
    # conv1: Conv1d(8 -> 32, k=5, pad=2)
    p["c1_w"] = nrm(ks[6], (32, grouped, 5))
    p["c1_b"] = nrm(ks[7], (32,))
    p["bn1_gamma"] = 1.0 + nrm(ks[8], (32,))
    p["bn1_beta"] = nrm(ks[9], (32,))
    p["bn1_mean"] = nrm(ks[10], (32,))
    p["bn1_var"] = 1.0 + jnp.abs(nrm(ks[11], (32,)))
    # conv2: Conv1d(32 -> 64, k=3, pad=1)
    p["c2_w"] = nrm(ks[12], (64, 32, 3))
    p["c2_b"] = nrm(ks[13], (64,))
    p["bn2_gamma"] = 1.0 + nrm(ks[14], (64,))
    p["bn2_beta"] = nrm(ks[15], (64,))
    p["bn2_mean"] = nrm(ks[16], (64,))
    p["bn2_var"] = 1.0 + jnp.abs(nrm(ks[17], (64,)))
    # fc1: LazyLinear(128) materialized with flat_dim inputs; fc2: Linear(128, classes)
    p["fc1_w"] = nrm(ks[18], (128, flat_dim))
    p["fc1_b"] = nrm(ks[19], (128,))
    p["fc2_w"] = nrm(ks[20], (num_classes, 128))
    p["fc2_b"] = nrm(ks[21], (num_classes,))
    return p


if __name__ == "__main__":
    import numpy as np

    # Small shapes consistent with the module: num_features=24 (div by 3),
    # input_length=48 -> stride-3 conv L1=16 -> pool 8 -> pool 4 -> flatten 64*4=256.
    B, num_features, L, num_classes = 2, 24, 48, 10
    L1 = (L - 3) // 3 + 1
    flat_dim = 64 * (L1 // 2 // 2)

    key = jax.random.PRNGKey(0)
    key_x, key_p = jax.random.split(key)
    x = jax.random.normal(key_x, (B, num_features, L), dtype=jnp.float32)
    params = make_params(key_p, num_features=num_features, num_classes=num_classes,
                         flat_dim=flat_dim)

    ref = jax.block_until_ready(ref_forward(x, params))

    # Structural check with f32 matmul operands (tight tolerance).
    fwd_f32 = jax.jit(functools.partial(tactile_cnn_forward,
                                        compute_dtype=jnp.float32))
    out_f32 = jax.block_until_ready(fwd_f32(x, params))
    assert out_f32.shape == (B, num_classes), out_f32.shape
    np.testing.assert_allclose(np.asarray(out_f32), np.asarray(ref),
                               rtol=1e-3, atol=1e-3)

    # Default fast path: bf16 matmul operands, f32 accumulation/epilogue.
    fwd = jax.jit(tactile_cnn_forward)
    out = jax.block_until_ready(fwd(x, params))
    assert out.shape == (B, num_classes), out.shape
    np.testing.assert_allclose(np.asarray(out), np.asarray(ref),
                               rtol=5e-2, atol=8e-2)

    print("KERNEL_OK")
</pallas_src>

<mosaic_0001>
module attributes {stable_mosaic.version = 11 : i64} {
  func.func @_tactile_fused_kernel(%arg0: i32, %arg1: memref<32x72xf32, #tpu.memory_space<vmem>>, %arg2: memref<72x8xf32, #tpu.memory_space<vmem>>, %arg3: memref<1x8xf32, #tpu.memory_space<vmem>>, %arg4: memref<40x32xf32, #tpu.memory_space<vmem>>, %arg5: memref<1x32xf32, #tpu.memory_space<vmem>>, %arg6: memref<96x64xf32, #tpu.memory_space<vmem>>, %arg7: memref<1x64xf32, #tpu.memory_space<vmem>>, %arg8: memref<4x64x128xf32, #tpu.memory_space<vmem>>, %arg9: memref<1x128xf32, #tpu.memory_space<vmem>>, %arg10: memref<128x128xf32, #tpu.memory_space<vmem>>, %arg11: memref<1x128xf32, #tpu.memory_space<vmem>>, %arg12: memref<2x128xf32, #tpu.memory_space<vmem>>, %arg13: memref<2x20x8xf32, #tpu.memory_space<vmem>>, %arg14: memref<2x10x32xf32, #tpu.memory_space<vmem>>, %arg15: memref<8x64xf32, #tpu.memory_space<vmem>>) attributes {dimension_semantics = [#tpu.dimension_semantics<parallel>], iteration_bounds = array<i64: 1>, scalar_prefetch = 0 : i64, scratch_operands = 3 : i64, tpu.core_type = #tpu.core_type<tc>, window_params = [{transform_indices = @transform_0, window_bounds = array<i64: 32, 72>}, {pipeline_mode = #tpu.pipeline_mode<synchronous>, transform_indices = @transform_1, window_bounds = array<i64: 72, 8>}, {pipeline_mode = #tpu.pipeline_mode<synchronous>, transform_indices = @transform_2, window_bounds = array<i64: 1, 8>}, {pipeline_mode = #tpu.pipeline_mode<synchronous>, transform_indices = @transform_3, window_bounds = array<i64: 40, 32>}, {pipeline_mode = #tpu.pipeline_mode<synchronous>, transform_indices = @transform_4, window_bounds = array<i64: 1, 32>}, {pipeline_mode = #tpu.pipeline_mode<synchronous>, transform_indices = @transform_5, window_bounds = array<i64: 96, 64>}, {pipeline_mode = #tpu.pipeline_mode<synchronous>, transform_indices = @transform_6, window_bounds = array<i64: 1, 64>}, {pipeline_mode = #tpu.pipeline_mode<synchronous>, transform_indices = @transform_7, window_bounds = array<i64: 4, 64, 128>}, {pipeline_mode = #tpu.pipeline_mode<synchronous>, transform_indices = @transform_8, window_bounds = array<i64: 1, 128>}, {pipeline_mode = #tpu.pipeline_mode<synchronous>, transform_indices = @transform_9, window_bounds = array<i64: 128, 128>}, {pipeline_mode = #tpu.pipeline_mode<synchronous>, transform_indices = @transform_10, window_bounds = array<i64: 1, 128>}, {transform_indices = @transform_11, window_bounds = array<i64: 2, 128>}]} {
    %cst = arith.constant 0.000000e+00 : f32
    %0 = vector.broadcast %cst : f32 to vector<2x2x8xf32>
    %c0 = arith.constant 0 : index
    %c0_0 = arith.constant 0 : index
    %c0_1 = arith.constant 0 : index
    %1 = vector.load %arg13[%c0, %c0_0, %c0_1] : memref<2x20x8xf32, #tpu.memory_space<vmem>>, vector<2x2x8xf32>
    tpu.vector_store %arg13[%c0, %c0_0, %c0_1], %0 {strides = array<i32>} : memref<2x20x8xf32, #tpu.memory_space<vmem>>, vector<2x2x8xf32>,
    %cst_2 = arith.constant 0.000000e+00 : f32
    %2 = vector.broadcast %cst_2 : f32 to vector<2x2x8xf32>
    %c0_3 = arith.constant 0 : index
    %c18 = arith.constant 18 : index
    %c0_4 = arith.constant 0 : index
    %3 = vector.load %arg13[%c0_3, %c18, %c0_4] : memref<2x20x8xf32, #tpu.memory_space<vmem>>, vector<2x2x8xf32>
    tpu.vector_store %arg13[%c0_3, %c18, %c0_4], %2 {strides = array<i32>} : memref<2x20x8xf32, #tpu.memory_space<vmem>>, vector<2x2x8xf32>,
    %cst_5 = arith.constant 0.000000e+00 : f32
    %4 = vector.broadcast %cst_5 : f32 to vector<2x1x32xf32>
    %c0_6 = arith.constant 0 : index
    %c0_7 = arith.constant 0 : index
    %c0_8 = arith.constant 0 : index
    %5 = vector.load %arg14[%c0_6, %c0_7, %c0_8] : memref<2x10x32xf32, #tpu.memory_space<vmem>>, vector<2x1x32xf32>
    tpu.vector_store %arg14[%c0_6, %c0_7, %c0_8], %4 {strides = array<i32>} : memref<2x10x32xf32, #tpu.memory_space<vmem>>, vector<2x1x32xf32>,
    %cst_9 = arith.constant 0.000000e+00 : f32
    %6 = vector.broadcast %cst_9 : f32 to vector<2x1x32xf32>
    %c0_10 = arith.constant 0 : index
    %c9 = arith.constant 9 : index
    %c0_11 = arith.constant 0 : index
    %7 = vector.load %arg14[%c0_10, %c9, %c0_11] : memref<2x10x32xf32, #tpu.memory_space<vmem>>, vector<2x1x32xf32>
    tpu.vector_store %arg14[%c0_10, %c9, %c0_11], %6 {strides = array<i32>} : memref<2x10x32xf32, #tpu.memory_space<vmem>>, vector<2x1x32xf32>,
    %c0_12 = arith.constant 0 : index
    %c0_13 = arith.constant 0 : index
    %8 = vector.load %arg1[%c0_12, %c0_13] : memref<32x72xf32, #tpu.memory_space<vmem>>, vector<32x72xf32>
    %c0_14 = arith.constant 0 : index
    %c0_15 = arith.constant 0 : index
    %9 = vector.load %arg2[%c0_14, %c0_15] : memref<72x8xf32, #tpu.memory_space<vmem>>, vector<72x8xf32>
    %cst_16 = arith.constant dense<0.000000e+00> : vector<32x8xf32>
    %10 = tpu.matmul %8, %9, %cst_16 {dimension_numbers = #tpu.dot_dimension_numbers<[1], [0], [0], [1], [0, 0, 1, 1], [], []>} : vector<32x72xf32>, vector<72x8xf32>, vector<32x8xf32> -> vector<32x8xf32>
    %c0_17 = arith.constant 0 : index
    %c0_18 = arith.constant 0 : index
    %11 = vector.load %arg3[%c0_17, %c0_18] : memref<1x8xf32, #tpu.memory_space<vmem>>, vector<1x8xf32>
    %12 = vector.broadcast %11 : vector<1x8xf32> to vector<32x8xf32>
    %13 = arith.addf %10, %12 : vector<32x8xf32>
    %cst_19 = arith.constant 0.000000e+00 : f32
    %14 = vector.broadcast %cst_19 : f32 to vector<32x8xf32>
    %15 = arith.maximumf %13, %14 : vector<32x8xf32>
    %16 = vector.shape_cast %15 : vector<32x8xf32> to vector<2x16x8xf32>
    %c0_20 = arith.constant 0 : index
    %c2 = arith.constant 2 : index
    %c0_21 = arith.constant 0 : index
    %17 = vector.load %arg13[%c0_20, %c2, %c0_21] : memref<2x20x8xf32, #tpu.memory_space<vmem>>, vector<2x16x8xf32>
    tpu.vector_store %arg13[%c0_20, %c2, %c0_21], %16 {strides = array<i32>} : memref<2x20x8xf32, #tpu.memory_space<vmem>>, vector<2x16x8xf32>,
    %c0_22 = arith.constant 0 : index
    %c0_23 = arith.constant 0 : index
    %c0_24 = arith.constant 0 : index
    %18 = tpu.strided_load %arg13[%c0_22, %c0_23, %c0_24] {strides = array<i32: 1, 2, 1>} : memref<2x20x8xf32, #tpu.memory_space<vmem>>, vector<2x8x8xf32>
    %c0_25 = arith.constant 0 : index
    %c1 = arith.constant 1 : index
    %c0_26 = arith.constant 0 : index
    %19 = tpu.strided_load %arg13[%c0_25, %c1, %c0_26] {strides = array<i32: 1, 2, 1>} : memref<2x20x8xf32, #tpu.memory_space<vmem>>, vector<2x8x8xf32>
    %c0_27 = arith.constant 0 : index
    %c2_28 = arith.constant 2 : index
    %c0_29 = arith.constant 0 : index
    %20 = tpu.strided_load %arg13[%c0_27, %c2_28, %c0_29] {strides = array<i32: 1, 2, 1>} : memref<2x20x8xf32, #tpu.memory_space<vmem>>, vector<2x8x8xf32>
    %c0_30 = arith.constant 0 : index
    %c3 = arith.constant 3 : index
    %c0_31 = arith.constant 0 : index
    %21 = tpu.strided_load %arg13[%c0_30, %c3, %c0_31] {strides = array<i32: 1, 2, 1>} : memref<2x20x8xf32, #tpu.memory_space<vmem>>, vector<2x8x8xf32>
    %c0_32 = arith.constant 0 : index
    %c4 = arith.constant 4 : index
    %c0_33 = arith.constant 0 : index
    %22 = tpu.strided_load %arg13[%c0_32, %c4, %c0_33] {strides = array<i32: 1, 2, 1>} : memref<2x20x8xf32, #tpu.memory_space<vmem>>, vector<2x8x8xf32>
    %23 = tpu.concatenate %18, %19, %20, %21, %22 in 2 : vector<2x8x8xf32>, vector<2x8x8xf32>, vector<2x8x8xf32>, vector<2x8x8xf32>, vector<2x8x8xf32> -> vector<2x8x40xf32>
    %c0_34 = arith.constant 0 : index
    %c1_35 = arith.constant 1 : index
    %c0_36 = arith.constant 0 : index
    %24 = tpu.strided_load %arg13[%c0_34, %c1_35, %c0_36] {strides = array<i32: 1, 2, 1>} : memref<2x20x8xf32, #tpu.memory_space<vmem>>, vector<2x8x8xf32>
    %c0_37 = arith.constant 0 : index
    %c2_38 = arith.constant 2 : index
    %c0_39 = arith.constant 0 : index
    %25 = tpu.strided_load %arg13[%c0_37, %c2_38, %c0_39] {strides = array<i32: 1, 2, 1>} : memref<2x20x8xf32, #tpu.memory_space<vmem>>, vector<2x8x8xf32>
    %c0_40 = arith.constant 0 : index
    %c3_41 = arith.constant 3 : index
    %c0_42 = arith.constant 0 : index
    %26 = tpu.strided_load %arg13[%c0_40, %c3_41, %c0_42] {strides = array<i32: 1, 2, 1>} : memref<2x20x8xf32, #tpu.memory_space<vmem>>, vector<2x8x8xf32>
    %c0_43 = arith.constant 0 : index
    %c4_44 = arith.constant 4 : index
    %c0_45 = arith.constant 0 : index
    %27 = tpu.strided_load %arg13[%c0_43, %c4_44, %c0_45] {strides = array<i32: 1, 2, 1>} : memref<2x20x8xf32, #tpu.memory_space<vmem>>, vector<2x8x8xf32>
    %c0_46 = arith.constant 0 : index
    %c5 = arith.constant 5 : index
    %c0_47 = arith.constant 0 : index
    %28 = tpu.strided_load %arg13[%c0_46, %c5, %c0_47] {strides = array<i32: 1, 2, 1>} : memref<2x20x8xf32, #tpu.memory_space<vmem>>, vector<2x8x8xf32>
    %29 = tpu.concatenate %24, %25, %26, %27, %28 in 2 : vector<2x8x8xf32>, vector<2x8x8xf32>, vector<2x8x8xf32>, vector<2x8x8xf32>, vector<2x8x8xf32> -> vector<2x8x40xf32>
    %30 = tpu.concatenate %23, %29 in 0 : vector<2x8x40xf32>, vector<2x8x40xf32> -> vector<4x8x40xf32>
    %31 = vector.shape_cast %30 : vector<4x8x40xf32> to vector<32x40xf32>
    %c0_48 = arith.constant 0 : index
    %c0_49 = arith.constant 0 : index
    %32 = vector.load %arg4[%c0_48, %c0_49] : memref<40x32xf32, #tpu.memory_space<vmem>>, vector<40x32xf32>
    %cst_50 = arith.constant dense<0.000000e+00> : vector<32x32xf32>
    %33 = tpu.matmul %31, %32, %cst_50 {dimension_numbers = #tpu.dot_dimension_numbers<[1], [0], [0], [1], [0, 0, 1, 1], [], []>} : vector<32x40xf32>, vector<40x32xf32>, vector<32x32xf32> -> vector<32x32xf32>
    %34 = vector.extract_strided_slice %33 {offsets = [0, 0], sizes = [16, 32], strides = [1, 1]} : vector<32x32xf32> to vector<16x32xf32>
    %35 = vector.extract_strided_slice %33 {offsets = [16, 0], sizes = [16, 32], strides = [1, 1]} : vector<32x32xf32> to vector<16x32xf32>
    %36 = arith.maximumf %34, %35 : vector<16x32xf32>
    %c0_51 = arith.constant 0 : index
    %c0_52 = arith.constant 0 : index
    %37 = vector.load %arg5[%c0_51, %c0_52] : memref<1x32xf32, #tpu.memory_space<vmem>>, vector<1x32xf32>
    %38 = vector.broadcast %37 : vector<1x32xf32> to vector<16x32xf32>
    %39 = arith.addf %36, %38 : vector<16x32xf32>
    %cst_53 = arith.constant 0.000000e+00 : f32
    %40 = vector.broadcast %cst_53 : f32 to vector<16x32xf32>
    %41 = arith.maximumf %39, %40 : vector<16x32xf32>
    %42 = vector.shape_cast %41 : vector<16x32xf32> to vector<2x8x32xf32>
    %c0_54 = arith.constant 0 : index
    %c1_55 = arith.constant 1 : index
    %c0_56 = arith.constant 0 : index
    %43 = vector.load %arg14[%c0_54, %c1_55, %c0_56] : memref<2x10x32xf32, #tpu.memory_space<vmem>>, vector<2x8x32xf32>
    tpu.vector_store %arg14[%c0_54, %c1_55, %c0_56], %42 {strides = array<i32>} : memref<2x10x32xf32, #tpu.memory_space<vmem>>, vector<2x8x32xf32>,
    %c0_57 = arith.constant 0 : index
    %c0_58 = arith.constant 0 : index
    %c0_59 = arith.constant 0 : index
    %44 = tpu.strided_load %arg14[%c0_57, %c0_58, %c0_59] {strides = array<i32: 1, 2, 1>} : memref<2x10x32xf32, #tpu.memory_space<vmem>>, vector<2x4x32xf32>
    %c0_60 = arith.constant 0 : index
    %c1_61 = arith.constant 1 : index
    %c0_62 = arith.constant 0 : index
    %45 = tpu.strided_load %arg14[%c0_60, %c1_61, %c0_62] {strides = array<i32: 1, 2, 1>} : memref<2x10x32xf32, #tpu.memory_space<vmem>>, vector<2x4x32xf32>
    %c0_63 = arith.constant 0 : index
    %c2_64 = arith.constant 2 : index
    %c0_65 = arith.constant 0 : index
    %46 = tpu.strided_load %arg14[%c0_63, %c2_64, %c0_65] {strides = array<i32: 1, 2, 1>} : memref<2x10x32xf32, #tpu.memory_space<vmem>>, vector<2x4x32xf32>
    %47 = tpu.concatenate %44, %45, %46 in 2 : vector<2x4x32xf32>, vector<2x4x32xf32>, vector<2x4x32xf32> -> vector<2x4x96xf32>
    %c0_66 = arith.constant 0 : index
    %c1_67 = arith.constant 1 : index
    %c0_68 = arith.constant 0 : index
    %48 = tpu.strided_load %arg14[%c0_66, %c1_67, %c0_68] {strides = array<i32: 1, 2, 1>} : memref<2x10x32xf32, #tpu.memory_space<vmem>>, vector<2x4x32xf32>
    %c0_69 = arith.constant 0 : index
    %c2_70 = arith.constant 2 : index
    %c0_71 = arith.constant 0 : index
    %49 = tpu.strided_load %arg14[%c0_69, %c2_70, %c0_71] {strides = array<i32: 1, 2, 1>} : memref<2x10x32xf32, #tpu.memory_space<vmem>>, vector<2x4x32xf32>
    %c0_72 = arith.constant 0 : index
    %c3_73 = arith.constant 3 : index
    %c0_74 = arith.constant 0 : index
    %50 = tpu.strided_load %arg14[%c0_72, %c3_73, %c0_74] {strides = array<i32: 1, 2, 1>} : memref<2x10x32xf32, #tpu.memory_space<vmem>>, vector<2x4x32xf32>
    %51 = tpu.concatenate %48, %49, %50 in 2 : vector<2x4x32xf32>, vector<2x4x32xf32>, vector<2x4x32xf32> -> vector<2x4x96xf32>
    %52 = tpu.concatenate %47, %51 in 0 : vector<2x4x96xf32>, vector<2x4x96xf32> -> vector<4x4x96xf32>
    %53 = vector.shape_cast %52 : vector<4x4x96xf32> to vector<16x96xf32>
    %c0_75 = arith.constant 0 : index
    %c0_76 = arith.constant 0 : index
    %54 = vector.load %arg6[%c0_75, %c0_76] : memref<96x64xf32, #tpu.memory_space<vmem>>, vector<96x64xf32>
    %cst_77 = arith.constant dense<0.000000e+00> : vector<16x64xf32>
    %55 = tpu.matmul %53, %54, %cst_77 {dimension_numbers = #tpu.dot_dimension_numbers<[1], [0], [0], [1], [0, 0, 1, 1], [], []>} : vector<16x96xf32>, vector<96x64xf32>, vector<16x64xf32> -> vector<16x64xf32>
    %56 = vector.extract_strided_slice %55 {offsets = [0, 0], sizes = [8, 64], strides = [1, 1]} : vector<16x64xf32> to vector<8x64xf32>
    %57 = vector.extract_strided_slice %55 {offsets = [8, 0], sizes = [8, 64], strides = [1, 1]} : vector<16x64xf32> to vector<8x64xf32>
    %58 = arith.maximumf %56, %57 : vector<8x64xf32>
    %c0_78 = arith.constant 0 : index
    %c0_79 = arith.constant 0 : index
    %59 = vector.load %arg7[%c0_78, %c0_79] : memref<1x64xf32, #tpu.memory_space<vmem>>, vector<1x64xf32>
    %60 = vector.broadcast %59 : vector<1x64xf32> to vector<8x64xf32>
    %61 = arith.addf %58, %60 : vector<8x64xf32>
    %cst_80 = arith.constant 0.000000e+00 : f32
    %62 = vector.broadcast %cst_80 : f32 to vector<8x64xf32>
    %63 = arith.maximumf %61, %62 : vector<8x64xf32>
    %c0_81 = arith.constant 0 : index
    %c0_82 = arith.constant 0 : index
    %64 = vector.load %arg15[%c0_81, %c0_82] : memref<8x64xf32, #tpu.memory_space<vmem>>, vector<8x64xf32>
    tpu.vector_store %arg15[%c0_81, %c0_82], %63 {strides = array<i32>} : memref<8x64xf32, #tpu.memory_space<vmem>>, vector<8x64xf32>,
    %cst_83 = arith.constant 0.000000e+00 : f32
    %65 = vector.broadcast %cst_83 : f32 to vector<2x128xf32>
    %c0_84 = arith.constant 0 : index
    %c0_85 = arith.constant 0 : index
    %66 = tpu.strided_load %arg15[%c0_84, %c0_85] {strides = array<i32: 4, 1>} : memref<8x64xf32, #tpu.memory_space<vmem>>, vector<2x64xf32>
    %c0_86 = arith.constant 0 : index
    %c0_87 = arith.constant 0 : index
    %c0_88 = arith.constant 0 : index
    %67 = vector.load %arg8[%c0_86, %c0_87, %c0_88] : memref<4x64x128xf32, #tpu.memory_space<vmem>>, vector<1x64x128xf32>
    %68 = vector.shape_cast %67 : vector<1x64x128xf32> to vector<64x128xf32>
    %cst_89 = arith.constant dense<0.000000e+00> : vector<2x128xf32>
    %69 = tpu.matmul %66, %68, %cst_89 {dimension_numbers = #tpu.dot_dimension_numbers<[1], [0], [0], [1], [0, 0, 1, 1], [], []>} : vector<2x64xf32>, vector<64x128xf32>, vector<2x128xf32> -> vector<2x128xf32>
    %70 = arith.addf %65, %69 : vector<2x128xf32>
    %c1_90 = arith.constant 1 : index
    %c0_91 = arith.constant 0 : index
    %71 = tpu.strided_load %arg15[%c1_90, %c0_91] {strides = array<i32: 4, 1>} : memref<8x64xf32, #tpu.memory_space<vmem>>, vector<2x64xf32>
    %c1_92 = arith.constant 1 : index
    %c0_93 = arith.constant 0 : index
    %c0_94 = arith.constant 0 : index
    %72 = vector.load %arg8[%c1_92, %c0_93, %c0_94] : memref<4x64x128xf32, #tpu.memory_space<vmem>>, vector<1x64x128xf32>
    %73 = vector.shape_cast %72 : vector<1x64x128xf32> to vector<64x128xf32>
    %cst_95 = arith.constant dense<0.000000e+00> : vector<2x128xf32>
    %74 = tpu.matmul %71, %73, %cst_95 {dimension_numbers = #tpu.dot_dimension_numbers<[1], [0], [0], [1], [0, 0, 1, 1], [], []>} : vector<2x64xf32>, vector<64x128xf32>, vector<2x128xf32> -> vector<2x128xf32>
    %75 = arith.addf %70, %74 : vector<2x128xf32>
    %c2_96 = arith.constant 2 : index
    %c0_97 = arith.constant 0 : index
    %76 = tpu.strided_load %arg15[%c2_96, %c0_97] {strides = array<i32: 4, 1>} : memref<8x64xf32, #tpu.memory_space<vmem>>, vector<2x64xf32>
    %c2_98 = arith.constant 2 : index
    %c0_99 = arith.constant 0 : index
    %c0_100 = arith.constant 0 : index
    %77 = vector.load %arg8[%c2_98, %c0_99, %c0_100] : memref<4x64x128xf32, #tpu.memory_space<vmem>>, vector<1x64x128xf32>
    %78 = vector.shape_cast %77 : vector<1x64x128xf32> to vector<64x128xf32>
    %cst_101 = arith.constant dense<0.000000e+00> : vector<2x128xf32>
    %79 = tpu.matmul %76, %78, %cst_101 {dimension_numbers = #tpu.dot_dimension_numbers<[1], [0], [0], [1], [0, 0, 1, 1], [], []>} : vector<2x64xf32>, vector<64x128xf32>, vector<2x128xf32> -> vector<2x128xf32>
    %80 = arith.addf %75, %79 : vector<2x128xf32>
    %c3_102 = arith.constant 3 : index
    %c0_103 = arith.constant 0 : index
    %81 = tpu.strided_load %arg15[%c3_102, %c0_103] {strides = array<i32: 4, 1>} : memref<8x64xf32, #tpu.memory_space<vmem>>, vector<2x64xf32>
    %c3_104 = arith.constant 3 : index
    %c0_105 = arith.constant 0 : index
    %c0_106 = arith.constant 0 : index
    %82 = vector.load %arg8[%c3_104, %c0_105, %c0_106] : memref<4x64x128xf32, #tpu.memory_space<vmem>>, vector<1x64x128xf32>
    %83 = vector.shape_cast %82 : vector<1x64x128xf32> to vector<64x128xf32>
    %cst_107 = arith.constant dense<0.000000e+00> : vector<2x128xf32>
    %84 = tpu.matmul %81, %83, %cst_107 {dimension_numbers = #tpu.dot_dimension_numbers<[1], [0], [0], [1], [0, 0, 1, 1], [], []>} : vector<2x64xf32>, vector<64x128xf32>, vector<2x128xf32> -> vector<2x128xf32>
    %85 = arith.addf %80, %84 : vector<2x128xf32>
    %c0_108 = arith.constant 0 : index
    %c0_109 = arith.constant 0 : index
    %86 = vector.load %arg9[%c0_108, %c0_109] : memref<1x128xf32, #tpu.memory_space<vmem>>, vector<1x128xf32>
    %87 = vector.broadcast %86 : vector<1x128xf32> to vector<2x128xf32>
    %88 = arith.addf %85, %87 : vector<2x128xf32>
    %cst_110 = arith.constant 0.000000e+00 : f32
    %89 = vector.broadcast %cst_110 : f32 to vector<2x128xf32>
    %90 = arith.maximumf %88, %89 : vector<2x128xf32>
    %c0_111 = arith.constant 0 : index
    %c0_112 = arith.constant 0 : index
    %91 = vector.load %arg10[%c0_111, %c0_112] : memref<128x128xf32, #tpu.memory_space<vmem>>, vector<128x128xf32>
    %cst_113 = arith.constant dense<0.000000e+00> : vector<2x128xf32>
    %92 = tpu.matmul %90, %91, %cst_113 {dimension_numbers = #tpu.dot_dimension_numbers<[1], [0], [0], [1], [0, 0, 1, 1], [], []>} : vector<2x128xf32>, vector<128x128xf32>, vector<2x128xf32> -> vector<2x128xf32>
    %c0_114 = arith.constant 0 : index
    %c0_115 = arith.constant 0 : index
    %93 = vector.load %arg11[%c0_114, %c0_115] : memref<1x128xf32, #tpu.memory_space<vmem>>, vector<1x128xf32>
    %94 = vector.broadcast %93 : vector<1x128xf32> to vector<2x128xf32>
    %95 = arith.addf %92, %94 : vector<2x128xf32>
    %c0_116 = arith.constant 0 : index
    %c0_117 = arith.constant 0 : index
    %96 = vector.load %arg12[%c0_116, %c0_117] : memref<2x128xf32, #tpu.memory_space<vmem>>, vector<2x128xf32>
    tpu.vector_store %arg12[%c0_116, %c0_117], %95 {strides = array<i32>} : memref<2x128xf32, #tpu.memory_space<vmem>>, vector<2x128xf32>,
    return
  }
  func.func @transform_0(%arg0: i32) -> (i32, i32) {
    %c0_i32 = arith.constant 0 : i32
    %c0_i32_0 = arith.constant 0 : i32
    return %arg0, %c0_i32 : i32, i32
  }
  func.func @transform_1(%arg0: i32) -> (i32, i32) {
    %c0_i32 = arith.constant 0 : i32
    %c0_i32_0 = arith.constant 0 : i32
    %c0_i32_1 = arith.constant 0 : i32
    return %c0_i32, %c0_i32_0 : i32, i32
  }
  func.func @transform_2(%arg0: i32) -> (i32, i32) {
    %c0_i32 = arith.constant 0 : i32
    %c0_i32_0 = arith.constant 0 : i32
    %c0_i32_1 = arith.constant 0 : i32
    return %c0_i32, %c0_i32_0 : i32, i32
  }
  func.func @transform_3(%arg0: i32) -> (i32, i32) {
    %c0_i32 = arith.constant 0 : i32
    %c0_i32_0 = arith.constant 0 : i32
    %c0_i32_1 = arith.constant 0 : i32
    return %c0_i32, %c0_i32_0 : i32, i32
  }
  func.func @transform_4(%arg0: i32) -> (i32, i32) {
    %c0_i32 = arith.constant 0 : i32
    %c0_i32_0 = arith.constant 0 : i32
    %c0_i32_1 = arith.constant 0 : i32
    return %c0_i32, %c0_i32_0 : i32, i32
  }
  func.func @transform_5(%arg0: i32) -> (i32, i32) {
    %c0_i32 = arith.constant 0 : i32
    %c0_i32_0 = arith.constant 0 : i32
    %c0_i32_1 = arith.constant 0 : i32
    return %c0_i32, %c0_i32_0 : i32, i32
  }
  func.func @transform_6(%arg0: i32) -> (i32, i32) {
    %c0_i32 = arith.constant 0 : i32
    %c0_i32_0 = arith.constant 0 : i32
    %c0_i32_1 = arith.constant 0 : i32
    return %c0_i32, %c0_i32_0 : i32, i32
  }
  func.func @transform_7(%arg0: i32) -> (i32, i32, i32) {
    %c0_i32 = arith.constant 0 : i32
    %c0_i32_0 = arith.constant 0 : i32
    %c0_i32_1 = arith.constant 0 : i32
    %c0_i32_2 = arith.constant 0 : i32
    return %c0_i32, %c0_i32_0, %c0_i32_1 : i32, i32, i32
  }
  func.func @transform_8(%arg0: i32) -> (i32, i32) {
    %c0_i32 = arith.constant 0 : i32
    %c0_i32_0 = arith.constant 0 : i32
    %c0_i32_1 = arith.constant 0 : i32
    return %c0_i32, %c0_i32_0 : i32, i32
  }
  func.func @transform_9(%arg0: i32) -> (i32, i32) {
    %c0_i32 = arith.constant 0 : i32
    %c0_i32_0 = arith.constant 0 : i32
    %c0_i32_1 = arith.constant 0 : i32
    return %c0_i32, %c0_i32_0 : i32, i32
  }
  func.func @transform_10(%arg0: i32) -> (i32, i32) {
    %c0_i32 = arith.constant 0 : i32
    %c0_i32_0 = arith.constant 0 : i32
    %c0_i32_1 = arith.constant 0 : i32
    return %c0_i32, %c0_i32_0 : i32, i32
  }
  func.func @transform_11(%arg0: i32) -> (i32, i32) {
    %c0_i32 = arith.constant 0 : i32
    %c0_i32_0 = arith.constant 0 : i32
    return %arg0, %c0_i32 : i32, i32
  }
}

</mosaic_0001>

<bundles_post_ra>
// kernel: tactile_cnn_forward.1
= control target key start
LH: loop header
LB: loop body
LE: loop exit
PB: predicated region body
PF: predicated region fallthrough
CT: control target
= control target key end

     0   :  { %vm69_vm0 = vcmask 588800   ;;  %s1908_s0 = inlined_call_operand.vmem [shape: f32[32,72], index: 0, kind: input, shape index: {}]   ;;  %s1909_s1 = inlined_call_operand.vmem [shape: f32[72,8], index: 1, kind: input, shape index: {}]   ;;  %s1910_s2 = inlined_call_operand.vmem [shape: f32[1,8], index: 2, kind: input, shape index: {}]   ;;  %s1911_s3 = inlined_call_operand.vmem [shape: f32[40,32], index: 3, kind: input, shape index: {}]   ;;  %s1912_s4 = inlined_call_operand.vmem [shape: f32[1,32], index: 4, kind: input, shape index: {}]   ;;  %s1913_s5 = inlined_call_operand.vmem [shape: f32[96,64], index: 5, kind: input, shape index: {}]   ;;  %s1914_s6 = inlined_call_operand.vmem [shape: f32[1,64], index: 6, kind: input, shape index: {}]   ;;  %s1915_s7 = inlined_call_operand.vmem [shape: f32[4,64,128], index: 7, kind: input, shape index: {}]   ;;  %s1916_s8 = inlined_call_operand.vmem [shape: f32[1,128], index: 8, kind: input, shape index: {}]   ;;  %s1917_s9 = inlined_call_operand.vmem [shape: f32[128,128], index: 9, kind: input, shape index: {}]   ;;  %s1918_s10 = inlined_call_operand.vmem [shape: f32[1,128], index: 10, kind: input, shape index: {}]   ;;  %s1919_s11 = inlined_call_operand.hbm [shape: f32[2,128], index: 11, kind: output, shape index: {}]  }
   0x1   :  { %v53_v0 = vld [vmem:[%s1909_s1] sm:$0xff]  ;;  %v54_v1 = vld [vmem:[%s1909_s1 + $0x8] sm:$0xff]  ;;  %v55_v2 = vld [vmem:[%s1909_s1 + $0x10] sm:$0xff] }
   0x2   :  { %v1320_v3 = vpack.c.bf16 %v54_v1, %v53_v0  ;;  %v56_v4 = vld [vmem:[%s1909_s1 + $0x18] sm:$0xff]  ;;  %v57_v6 = vld [vmem:[%s1909_s1 + $0x20] sm:$0xff]  ;;  %v58_v7 = vld [vmem:[%s1909_s1 + $0x28] sm:$0xff] }
   0x3   :  { %v1324_v5 = vpack.c.bf16 %v56_v4, %v55_v2  ;;  %v49_v8 = vld [vmem:[%s1908_s0] sm:$0xff] }
   0x4   :  { %1321 = vmatprep.subr.bf16.mxu0 %v1320_v3  ;;  %1160 = vmatprep.mubr.msk.f32.mxu0 %vm69_vm0, %v49_v8 }
   0x5   :  { %1323 = vmatpush3.bf16.msra.mxu0 %v1320_v3 }
   0x6   :  { %16 = vsyncpa [#allocation6], 0  ;;  %1325 = vmatprep.subr.bf16.mxu0 %v1324_v5  ;;  %v1328_v9 = vpack.c.bf16 %v58_v7, %v57_v6  ;;  %v59_v10 = vld [vmem:[%s1909_s1 + $0x30] sm:$0xff]  ;;  %v60_v11 = vld [vmem:[%s1909_s1 + $0x38] sm:$0xff]  ;;  %vm39_vm1 = vcmask 58368   ;;  %v1473_v17 = vmov 0.0  }
   0x7   :  { %v1332_v12 = vpack.c.bf16 %v60_v11, %v59_v10  ;;  %v61_v13 = vld [vmem:[%s1909_s1 + $0x40] sm:$0xff]  ;;  %v50_v14 = vld [vmem:[%s1908_s0 + $0x8] sm:$0xff]  ;;  %v51_v15 = vld [vmem:[%s1908_s0 + $0x10] sm:$0xff]  ;;  %40 = vst.msk [vmem:[#allocation2] sm:$0x3] %vm39_vm1, %v1473_v17  ;;  %vm171_vm2 = vcmask 64512  }
   0x8   :  { %v52_v16 = vld [vmem:[%s1908_s0 + $0x18] sm:$0xff]  ;;  %41 = vst.msk [vmem:[#allocation2 + $0x18] sm:$0x3] %vm39_vm1, %v1473_v17  ;;  %42 = vst.msk [vmem:[#allocation2 + $0x12] sm:$0x3] %vm39_vm1, %v1473_v17  ;;  %s1474_s0 = smov 16  }
   0x9   :  { %1327 = vmatpush3.bf16.msra.mxu0 %v1324_v5  ;;  %43 = vst.msk [vmem:[#allocation2 + $0x2a] sm:$0x3] %vm39_vm1, %v1473_v17  ;;  %v1010_v18 = vld [vmem:[%s1910_s2] ss:$0 sm:$0xff]  ;;  %s1475_s2 = smov 8   ;;  %v277_v34 = vld [vmem:[%s1911_s3 + $0x8] sm:$0xff] }
   0xa   :  { %1329 = vmatprep.subr.bf16.mxu0 %v1328_v9  ;;  %v276_v33 = vld [vmem:[%s1911_s3] sm:$0xff]  ;;  %s1476_s29 = smov 24   ;;  %v278_v38 = vld [vmem:[%s1911_s3 + $0x10] sm:$0xff]  ;;  %v279_v39 = vld [vmem:[%s1911_s3 + $0x18] sm:$0xff]  ;;  %s1477_s15 = smov 32   ;;  %vm229_vm3 = vcmask 130048  }
   0xb   :  { %v1336_v35 = vpack.c.bf16 %v277_v34, %v276_v33  ;;  %v1340_v40 = vpack.c.bf16 %v279_v39, %v278_v38  ;;  %v280_v43 = vld [vmem:[%s1911_s3 + $0x20] sm:$0xff]  ;;  %vm232_vm4 = vcmask 195584   ;;  %vm235_vm5 = vcmask 261120   ;;  %v453_v33 = vld [vmem:[%s1913_s5 + $0x28] sm:$0xff]  ;;  %v454_v39 = vld [vmem:[%s1913_s5 + $0x30] sm:$0xff]  ;;  %s1478_s20 = smov 64  }
   0xc   :  { %vm281_vm6 = vcmask 326656   ;;  %vm44_vm7 = vcmask 253952   ;;  %vm423_vm8 = vcmask 523264   ;;  %vm466_vm9 = vcmask 785408   ;;  %s1481_s3 = smov [#allocation5]  }
   0xd   :  { %1331 = vmatpush3.bf16.msra.mxu0 %v1328_v9  ;;  %48 = vst.msk [vmem:[#allocation3 + $0x19] sm:$0x1] %vm44_vm7, %v1473_v17  ;;  %45 = vst.msk [vmem:[#allocation3] sm:$0x1] %vm44_vm7, %v1473_v17  ;;  %vm1480_vm10 = vmmov 0   ;;  %s1002_s18 = sshll.u32 %s1481_s3, 4  ;;  %s1003_s18 = int_to_ptr.vmem [resolvable:$true] %s1002_s18 }
   0xe   :  { %1333 = vmatprep.subr.bf16.mxu0 %v1332_v12  ;;  %46 = vst.msk [vmem:[#allocation3 + $0x10] sm:$0x1] %vm44_vm7, %v1473_v17  ;;  %47 = vst.msk [vmem:[#allocation3 + $0x9] sm:$0x1] %vm44_vm7, %v1473_v17  ;;  %s1449_s19 = scalar_lea.vmem %s1003_s18, 32  ;;  %p1454_p1 = scmp.lt.s32.totalorder %s1003_s18, %s1003_s18 }
   0xf   :  { %p1450_p0 = scmp.ne.s32.totalorder %s1003_s18, %s1449_s19  ;;  %p1455_p2 = scmp.lt.s32.totalorder %s1449_s19, %s1449_s19 }
  0x11   :  { %1335 = vmatpush3.bf16.msra.mxu0 %v1332_v12  ;;  %p1456_p3 = por %p1455_p2, %p1454_p1 }
  0x12   :  { %1158 = vmatprep.subr.mxu0 %v61_v13 }
  0x13   :  { %p1457_p4 = pnand %p1456_p3, %p1450_p0 }
  0x15   :  { %1159 = vmatpush3.msra.mxu0 %v61_v13 }
  0x16   :  { %1161 = vmatmul.mubr.msk.f32.vlgmr.msra.gmra.mrb[0].mxu0 %vm69_vm0, %v50_v14  ;;  %1337 = vmatprep.subr.bf16.mxu0 %v1336_v35 }
  0x17   :  { %1163 = vmatprep.mubr.msk.f32.mxu0 %vm69_vm0, %v51_v15  ;;  %1339 = vmatpush3.bf16.msra.mxu0 %v1336_v35 }
  0x18   :  { %1341 = vmatprep.subr.bf16.mxu0 %v1340_v40 }
  0x1a   :  { %1164 = vmatmul.mubr.msk.f32.gmra.mrb[2].mxu0 %vm69_vm0, %v52_v16 }
  0x1b   :  { %1343 = vmatpush3.bf16.msra.mxu0 %v1340_v40  ;;  %v455_v40 = vld [vmem:[%s1913_s5 + $0x38] sm:$0xff] }
  0x1c   :  { %1174 = vmatprep.subr.mxu0 %v280_v43 }
  0x1f   :  { %1175 = vmatpush3.msra.mxu0 %v280_v43  ;;  %v457_v43 = vld [vmem:[%s1913_s5 + $0x48] sm:$0xff] }
  0xe9   :  { %v1162_v19 = vpop.f32.mrb[0].mxu0 }
  0xea   :  { %v154_v20 = vadd.f32 %v1162_v19, %v1010_v18  ;;  %v148_v21 = vpop.f32.mrb[1].mxu0  ;;  %v448_v19 = vld [vmem:[%s1913_s5] sm:$0xff] }
  0xeb   :  { %v149_v22 = vadd.f32 %v1010_v18, %v148_v21  ;;  %v450_v21 = vld [vmem:[%s1913_s5 + $0x10] sm:$0xff] }
  0xec   :  { %v168_v23 = vmax.f32 %v154_v20, 0.0  ;;  %v449_v20 = vld [vmem:[%s1913_s5 + $0x8] sm:$0xff] }
  0xed   :  { %v167_v24 = vmax.f32 %v149_v22, 0.0  ;;  %v1165_v25 = vpop.f32.mrb[2].mxu0  ;;  %v1344_v22 = vpack.c.bf16 %v449_v20, %v448_v19  ;;  %v1026_v19 = vld [vmem:[%s1915_s7 + $0x58] sm:$0xff] }
  0xee   :  { %173 = vst.msk [vmem:[#allocation2 + $0xa] sm:$0xff] %vm171_vm2, %v168_v23  ;;  %v164_v26 = vadd.f32 %v1165_v25, %v1010_v18  ;;  %v158_v27 = vpop.f32.mrb[3].mxu0  ;;  %v451_v23 = vld [vmem:[%s1913_s5 + $0x18] sm:$0xff] }
  0xef   :  { %172 = vst.msk [vmem:[#allocation2 + $0x2] sm:$0xff] %vm171_vm2, %v167_v24  ;;  %v159_v28 = vadd.f32 %v1010_v18, %v158_v27  ;;  %v1348_v24 = vpack.c.bf16 %v451_v23, %v450_v21  ;;  %1345 = vmatprep.subr.bf16.mxu1 %v1344_v22  ;;  %v1035_v21 = vld [vmem:[%s1915_s7 + $0x90] sm:$0xff] }
  0xf0   :  { %v170_v29 = vmax.f32 %v164_v26, 0.0  ;;  %1347 = vmatpush3.bf16.msra.mxu1 %v1344_v22  ;;  %v1036_v22 = vld [vmem:[%s1915_s7 + $0x98] sm:$0xff] }
  0xf1   :  { %v169_v30 = vmax.f32 %v159_v28, 0.0  ;;  %1349 = vmatprep.subr.bf16.mxu1 %v1348_v24  ;;  %v1019_v28 = vld [vmem:[%s1912_s4] ss:$0 sm:$0xff]  ;;  %v1396_v23 = vpack.c.bf16 %v1036_v22, %v1035_v21  ;;  %v912_v22 = vld [vmem:[%s1917_s9 + $0x50] sm:$0xff] }
  0xf2   :  { %175 = vst.msk [vmem:[#allocation2 + $0x22] sm:$0xff] %vm171_vm2, %v170_v29 }
  0xf3   :  { %174 = vst.msk [vmem:[#allocation2 + $0x1a] sm:$0xff] %vm171_vm2, %v169_v30 }
  0xf4   :  { %1351 = vmatpush3.bf16.msra.mxu1 %v1348_v24  ;;  %v1027_v24 = vld [vmem:[%s1915_s7 + $0x60] sm:$0xff] }
  0xf6   :  { %v184_v31 = vld [vmem:[#allocation2 + $0x2] ss:$2 sm:$0xff]  ;;  %v1596_v32 = vld [vmem:[#allocation2 + $0x1] ss:$2 sm:$0xff] }
  0xf7   :  { %205 = vrot.lane.b32.xlu1 %v184_v31, %s1474_s0  ;;  %197 = vrot.lane.b32.xlu0 %v1596_v32, %s1475_s2  ;;  %v188_v37 = vld [vmem:[#allocation2 + $0x3] ss:$2 sm:$0xff]  ;;  %v192_v42 = vld [vmem:[#allocation2 + $0x4] ss:$2 sm:$0xff] }
  0xf8   :  { %v239_v47 = vld [vmem:[#allocation2 + $0x5] ss:$2 sm:$0xff]  ;;  %v176_v50 = vld [vmem:[#allocation2] ss:$2 sm:$0xff] }
  0xfa   :  { %v186_v36 = vld [vmem:[#allocation2 + $0x1a] ss:$2 sm:$0xff]  ;;  %v190_v41 = vld [vmem:[#allocation2 + $0x1b] ss:$2 sm:$0xff] }
  0xfb   :  { %207 = vrot.lane.b32.xlu1 %v186_v36, %s1474_s0  ;;  %213 = vrot.lane.b32.xlu0 %v188_v37, %s1476_s29  ;;  %v194_v44 = vld [vmem:[#allocation2 + $0x1c] ss:$2 sm:$0xff]  ;;  %v182_v45 = vld [vmem:[#allocation2 + $0x19] ss:$2 sm:$0xff] }
  0xfc   :  { %v241_v46 = vld [vmem:[#allocation2 + $0x1d] ss:$2 sm:$0xff]  ;;  %v178_v0 = vld [vmem:[#allocation2 + $0x18] ss:$2 sm:$0xff] }
  0xff   :  { %215 = vrot.lane.b32.xlu1 %v190_v41, %s1476_s29  ;;  %221 = vrot.lane.b32.xlu0 %v192_v42, %s1477_s15 }
 0x103   :  { %223 = vrot.lane.b32.xlu1 %v194_v44, %s1477_s15  ;;  %242 = vrot.lane.b32.xlu0 %v184_v31, %s1475_s2 }
 0x107   :  { %244 = vrot.lane.b32.xlu1 %v186_v36, %s1475_s2  ;;  %248 = vrot.lane.b32.xlu0 %v188_v37, %s1474_s0 }
 0x10b   :  { %250 = vrot.lane.b32.xlu1 %v190_v41, %s1474_s0  ;;  %199 = vrot.lane.b32.xlu0 %v182_v45, %s1475_s2  ;;  %v1356_v41 = vpack.c.bf16 %v455_v40, %v454_v39 }
 0x10f   :  { %256 = vrot.lane.b32.xlu1 %v194_v44, %s1476_s29  ;;  %254 = vrot.lane.b32.xlu0 %v192_v42, %s1476_s29  ;;  %v456_v42 = vld [vmem:[%s1913_s5 + $0x40] sm:$0xff] }
 0x110   :  { %v1360_v44 = vpack.c.bf16 %v457_v43, %v456_v42  ;;  %v558_v42 = vld [vmem:[%s1915_s7] sm:$0xff]  ;;  %v559_v43 = vld [vmem:[%s1915_s7 + $0x8] sm:$0xff] }
 0x113   :  { %264 = vrot.lane.b32.xlu1 %v241_v46, %s1477_s15  ;;  %262 = vrot.lane.b32.xlu0 %v239_v47, %s1477_s15 }
 0x169   :  { %v206_v48 = vpop.permute.xlu1 %205  ;;  %v198_v49 = vpop.permute.xlu0 %197 }
 0x16a   :  { %v227_v51 = vsel %vm171_vm2, %v176_v50, %v198_v49  ;;  %v459_v49 = vld [vmem:[%s1913_s5 + $0x58] sm:$0xff] }
 0x16b   :  { %v230_v54 = vsel %vm229_vm3, %v227_v51, %v206_v48  ;;  %v458_v48 = vld [vmem:[%s1913_s5 + $0x50] sm:$0xff] }
 0x16c   :  { %v1364_v51 = vpack.c.bf16 %v459_v49, %v458_v48 }
 0x16d   :  { %v208_v52 = vpop.permute.xlu1 %207  ;;  %v214_v53 = vpop.permute.xlu0 %213 }
 0x16e   :  { %v233_v55 = vsel %vm232_vm4, %v230_v54, %v214_v53 }
 0x171   :  { %v216_v56 = vpop.permute.xlu1 %215  ;;  %v222_v57 = vpop.permute.xlu0 %221 }
 0x172   :  { %v236_v58 = vsel %vm235_vm5, %v233_v55, %v222_v57 }
 0x173   :  { %1176 = vmatprep.mubr.msk.f32.mxu0 %vm281_vm6, %v236_v58 }
 0x175   :  { %v224_v59 = vpop.permute.xlu1 %223  ;;  %v243_v60 = vpop.permute.xlu0 %242 }
 0x176   :  { %v268_v8 = vsel %vm171_vm2, %v1596_v32, %v243_v60  ;;  %v452_v32 = vld [vmem:[%s1913_s5 + $0x20] sm:$0xff] }
 0x177   :  { %v1352_v35 = vpack.c.bf16 %v453_v33, %v452_v32  ;;  %v1039_v32 = vld [vmem:[%s1915_s7 + $0xb0] sm:$0xff]  ;;  %v1040_v33 = vld [vmem:[%s1915_s7 + $0xb8] sm:$0xff] }
 0x179   :  { %v245_v61 = vpop.permute.xlu1 %244  ;;  %v249_v62 = vpop.permute.xlu0 %248  ;;  %1353 = vmatprep.subr.bf16.mxu1 %v1352_v35 }
 0x17a   :  { %v269_v9 = vsel %vm171_vm2, %v182_v45, %v245_v61  ;;  %v270_v10 = vsel %vm229_vm3, %v268_v8, %v249_v62  ;;  %1355 = vmatpush3.bf16.msra.mxu1 %v1352_v35  ;;  %v1402_v35 = vpack.c.bf16 %v1040_v33, %v1039_v32 }
 0x17b   :  { %1357 = vmatprep.subr.bf16.mxu1 %v1356_v41 }
 0x17d   :  { %v251_v63 = vpop.permute.xlu1 %250  ;;  %v200_v1 = vpop.permute.xlu0 %199 }
 0x17e   :  { %v228_v2 = vsel %vm171_vm2, %v178_v0, %v200_v1  ;;  %v271_v11 = vsel %vm229_vm3, %v269_v9, %v251_v63  ;;  %1359 = vmatpush3.bf16.msra.mxu1 %v1356_v41 }
 0x17f   :  { %v231_v3 = vsel %vm229_vm3, %v228_v2, %v208_v52  ;;  %1361 = vmatprep.subr.bf16.mxu1 %v1360_v44  ;;  %v1479_v52 = vmov 0.0|0.0  }
 0x180   :  { %v234_v4 = vsel %vm232_vm4, %v231_v3, %v216_v56  ;;  %1368 = vmatprep.subr.bf16.mxu0 %v1479_v52 }
 0x181   :  { %v257_v5 = vpop.permute.xlu1 %256  ;;  %v255_v6 = vpop.permute.xlu0 %254  ;;  %v237_v7 = vsel %vm235_vm5, %v234_v4, %v224_v59 }
 0x182   :  { %1177 = vmatmul.mubr.msk.f32.vlgmr.msra.gmra.mrb[4].mxu0 %vm281_vm6, %v237_v7  ;;  %v273_v12 = vsel %vm232_vm4, %v271_v11, %v257_v5  ;;  %v272_v13 = vsel %vm232_vm4, %v270_v10, %v255_v6  ;;  %1363 = vmatpush3.bf16.msra.mxu1 %v1360_v44  ;;  %v1023_v11 = vld [vmem:[%s1915_s7 + $0x40] sm:$0xff]  ;;  %v1381_v44 = vpack.c.bf16 %v559_v43, %v558_v42 }
 0x183   :  { %1365 = vmatprep.subr.bf16.mxu1 %v1364_v51 }
 0x185   :  { %v265_v14 = vpop.permute.xlu1 %264  ;;  %v263_v15 = vpop.permute.xlu0 %262 }
 0x186   :  { %v275_v16 = vsel %vm235_vm5, %v273_v12, %v265_v14  ;;  %v274_v18 = vsel %vm235_vm5, %v272_v13, %v263_v15  ;;  %1367 = vmatpush3.bf16.msra.mxu1 %v1364_v51  ;;  %v1024_v12 = vld [vmem:[%s1915_s7 + $0x48] sm:$0xff]  ;;  %v1033_v14 = vld [vmem:[%s1915_s7 + $0x80] sm:$0xff] }
 0x187   :  { %1179 = vmatprep.mubr.msk.f32.mxu0 %vm281_vm6, %v274_v18  ;;  %1392 = vmatprep.subr.bf16.mxu1 %v1479_v52  ;;  %v1369_v13 = vpack.c.bf16 %v1024_v12, %v1023_v11  ;;  %v1034_v15 = vld [vmem:[%s1915_s7 + $0x88] sm:$0xff]  ;;  %v1025_v18 = vld [vmem:[%s1915_s7 + $0x50] sm:$0xff]  ;;  %v906_v12 = vld [vmem:[%s1917_s9 + $0x20] sm:$0xff] }
 0x188   :  { %1180 = vmatmul.mubr.msk.f32.gmra.mrb[6].mxu0 %vm281_vm6, %v275_v16  ;;  %v1393_v16 = vpack.c.bf16 %v1034_v15, %v1033_v14  ;;  %v1372_v20 = vpack.c.bf16 %v1026_v19, %v1025_v18  ;;  %v563_v51 = vld [vmem:[%s1915_s7 + $0x28] sm:$0xff]  ;;  %v908_v15 = vld [vmem:[%s1917_s9 + $0x30] sm:$0xff]  ;;  %v910_v19 = vld [vmem:[%s1917_s9 + $0x40] sm:$0xff] }
 0x189   :  { %1370 = vmatpush3.bf16.msra.mxu0 %v1369_v13  ;;  %1225 = vmatprep.mubr.msk.f32.mxu0 %vm1480_vm10, %v1473_v17  ;;  %v907_v13 = vld [vmem:[%s1917_s9 + $0x28] sm:$0xff] }
 0x18a   :  { %1371 = vmatprep.subr.bf16.mxu0 %v1479_v52  ;;  %v1423_v14 = vpack.c.bf16 %v907_v13, %v906_v12 }
 0x18d   :  { %1373 = vmatpush3.bf16.msra.mxu0 %v1372_v20  ;;  %v911_v20 = vld [vmem:[%s1917_s9 + $0x48] sm:$0xff] }
 0x18e   :  { %1374 = vmatprep.subr.bf16.mxu0 %v1479_v52  ;;  %v1429_v21 = vpack.c.bf16 %v911_v20, %v910_v19 }
 0x255   :  { %v1178_v25 = vpop.f32.mrb[4].mxu0 }
 0x256   :  { %v360_v26 = vpop.f32.mrb[5].mxu0 }
 0x25b   :  { %v1181_v27 = vpop.f32.mrb[6].mxu0 }
 0x25c   :  { %v380_v29 = vmax.f32 %v1178_v25, %v1181_v27  ;;  %v370_v30 = vpop.f32.mrb[7].mxu0  ;;  %v1028_v25 = vld [vmem:[%s1915_s7 + $0x68] sm:$0xff] }
 0x25d   :  { %v379_v31 = vmax.f32 %v360_v26, %v370_v30  ;;  %v1037_v26 = vld [vmem:[%s1915_s7 + $0xa0] sm:$0xff]  ;;  %v1375_v27 = vpack.c.bf16 %v1028_v25, %v1027_v24  ;;  %v1030_v30 = vld [vmem:[%s1915_s7 + $0x78] sm:$0xff] }
 0x25e   :  { %v389_v34 = vadd.f32 %v1019_v28, %v380_v29  ;;  %v1029_v29 = vld [vmem:[%s1915_s7 + $0x70] sm:$0xff]  ;;  %v914_v25 = vld [vmem:[%s1917_s9 + $0x60] sm:$0xff] }
 0x25f   :  { %v388_v36 = vadd.f32 %v1019_v28, %v379_v31  ;;  %v1038_v28 = vld [vmem:[%s1915_s7 + $0xa8] sm:$0xff]  ;;  %1376 = vmatpush3.bf16.msra.mxu0 %v1375_v27 }
 0x260   :  { %v391_v37 = vmax.f32 %v389_v34, 0.0  ;;  %v1399_v31 = vpack.c.bf16 %v1038_v28, %v1037_v26  ;;  %v1378_v34 = vpack.c.bf16 %v1030_v30, %v1029_v29  ;;  %1377 = vmatprep.subr.bf16.mxu0 %v1479_v52  ;;  %v915_v26 = vld [vmem:[%s1917_s9 + $0x68] sm:$0xff]  ;;  %v916_v28 = vld [vmem:[%s1917_s9 + $0x70] sm:$0xff]  ;;  %v917_v29 = vld [vmem:[%s1917_s9 + $0x78] sm:$0xff] }
 0x261   :  { %v390_v38 = vmax.f32 %v388_v36, 0.0  ;;  %v1435_v27 = vpack.c.bf16 %v915_v26, %v914_v25  ;;  %v1438_v30 = vpack.c.bf16 %v917_v29, %v916_v28 }
 0x262   :  { %393 = vst.msk [vmem:[#allocation3 + $0x11] sm:$0xff] %vm235_vm5, %v391_v37 }
 0x263   :  { %392 = vst.msk [vmem:[#allocation3 + $0x1] sm:$0xff] %vm235_vm5, %v390_v38  ;;  %1379 = vmatpush3.bf16.msra.mxu0 %v1378_v34  ;;  %v1022_v38 = vld [vmem:[%s1914_s6] ss:$0 sm:$0xff] }
 0x264   :  { %1380 = vmatprep.subr.bf16.mxu0 %v1479_v52 }
 0x269   :  { %v400_v45 = vld [vmem:[#allocation3 + $0x11] ss:$2 sm:$0xf]  ;;  %v404_v47 = vld [vmem:[#allocation3 + $0x12] ss:$2 sm:$0xf] }
 0x26a   :  { %409 = vrot.lane.b32.xlu1 %v400_v45, %s1477_s15  ;;  %v398_v46 = vld [vmem:[#allocation3 + $0x1] ss:$2 sm:$0xf]  ;;  %v402_v50 = vld [vmem:[#allocation3 + $0x2] ss:$2 sm:$0xf] }
 0x26b   :  { %407 = vrot.lane.b32.xlu0 %v398_v46, %s1477_s15  ;;  %v429_v53 = vld [vmem:[#allocation3 + $0x13] ss:$2 sm:$0xf]  ;;  %v427_v54 = vld [vmem:[#allocation3 + $0x3] ss:$2 sm:$0xf] }
 0x26c   :  { %v396_v57 = vld [vmem:[#allocation3 + $0x10] ss:$2 sm:$0xf]  ;;  %v394_v59 = vld [vmem:[#allocation3] ss:$2 sm:$0xf] }
 0x26e   :  { %417 = vrot.lane.b32.xlu1 %v404_v47, %s1478_s20 }
 0x26f   :  { %415 = vrot.lane.b32.xlu0 %v402_v50, %s1478_s20 }
 0x272   :  { %432 = vrot.lane.b32.xlu1 %v404_v47, %s1477_s15 }
 0x273   :  { %430 = vrot.lane.b32.xlu0 %v402_v50, %s1477_s15  ;;  %v562_v50 = vld [vmem:[%s1915_s7 + $0x20] sm:$0xff] }
 0x276   :  { %440 = vrot.lane.b32.xlu1 %v429_v53, %s1478_s20  ;;  %v1387_v53 = vpack.c.bf16 %v563_v51, %v562_v50 }
 0x277   :  { %438 = vrot.lane.b32.xlu0 %v427_v54, %s1478_s20  ;;  %v564_v54 = vld [vmem:[%s1915_s7 + $0x30] sm:$0xff] }
 0x2dc   :  { %v410_v55 = vpop.permute.xlu1 %409 }
 0x2dd   :  { %v408_v56 = vpop.permute.xlu0 %407  ;;  %v422_v58 = vsel %vm235_vm5, %v396_v57, %v410_v55  ;;  %v565_v55 = vld [vmem:[%s1915_s7 + $0x38] sm:$0xff]  ;;  %v1042_v57 = vld [vmem:[%s1915_s7 + $0xc0] sm:$0xff] }
 0x2de   :  { %v421_v61 = vsel %vm235_vm5, %v394_v59, %v408_v56  ;;  %v1390_v56 = vpack.c.bf16 %v565_v55, %v564_v54 }
 0x2e0   :  { %v418_v60 = vpop.permute.xlu1 %417 }
 0x2e1   :  { %v425_v62 = vsel %vm423_vm8, %v422_v58, %v418_v60  ;;  %v416_v63 = vpop.permute.xlu0 %415  ;;  %v1043_v58 = vld [vmem:[%s1915_s7 + $0xc8] sm:$0xff]  ;;  %v1044_v60 = vld [vmem:[%s1915_s7 + $0xd0] sm:$0xff] }
 0x2e2   :  { %v424_v0 = vsel %vm423_vm8, %v421_v61, %v416_v63  ;;  %v1405_v59 = vpack.c.bf16 %v1043_v58, %v1042_v57  ;;  %v1045_v61 = vld [vmem:[%s1915_s7 + $0xd8] sm:$0xff] }
 0x2e3   :  { %v464_v1 = vcombine.low %v424_v0, %v425_v62  ;;  %v1408_v63 = vpack.c.bf16 %v1045_v61, %v1044_v60  ;;  %v1046_v0 = vld [vmem:[%s1915_s7 + $0xe0] sm:$0xff] }
 0x2e4   :  { %v433_v2 = vpop.permute.xlu1 %432 }
 0x2e5   :  { %v431_v3 = vpop.permute.xlu0 %430  ;;  %1206 = vmatprep.mubr.msk.f32.mxu1 %vm466_vm9, %v464_v1  ;;  %v445_v4 = vsel %vm235_vm5, %v400_v45, %v433_v2  ;;  %v560_v45 = vld [vmem:[%s1915_s7 + $0x10] sm:$0xff]  ;;  %v1047_v1 = vld [vmem:[%s1915_s7 + $0xe8] sm:$0xff] }
 0x2e6   :  { %v444_v6 = vsel %vm235_vm5, %v398_v46, %v431_v3  ;;  %v561_v46 = vld [vmem:[%s1915_s7 + $0x18] sm:$0xff]  ;;  %v1411_v2 = vpack.c.bf16 %v1047_v1, %v1046_v0  ;;  %v1048_v3 = vld [vmem:[%s1915_s7 + $0xf0] sm:$0xff] }
 0x2e7   :  { %v1384_v49 = vpack.c.bf16 %v561_v46, %v560_v45 }
 0x2e8   :  { %v441_v5 = vpop.permute.xlu1 %440 }
 0x2e9   :  { %v447_v7 = vsel %vm423_vm8, %v445_v4, %v441_v5  ;;  %v439_v8 = vpop.permute.xlu0 %438 }
 0x2ea   :  { %v446_v9 = vsel %vm423_vm8, %v444_v6, %v439_v8  ;;  %v902_v6 = vld [vmem:[%s1917_s9] sm:$0xff]  ;;  %v904_v8 = vld [vmem:[%s1917_s9 + $0x10] sm:$0xff] }
 0x2eb   :  { %v465_v10 = vcombine.low %v446_v9, %v447_v7  ;;  %v903_v7 = vld [vmem:[%s1917_s9 + $0x8] sm:$0xff] }
 0x2ec   :  { %v1417_v9 = vpack.c.bf16 %v903_v7, %v902_v6 }
 0x2ed   :  { %1207 = vmatmul.mubr.msk.f32.vlgmr.msra.gmra.mrb[0].mxu1 %vm466_vm9, %v465_v10  ;;  %v905_v10 = vld [vmem:[%s1917_s9 + $0x18] sm:$0xff] }
 0x2ee   :  { %1394 = vmatpush3.bf16.msra.mxu1 %v1393_v16  ;;  %1263 = vmatprep.mubr.msk.f32.mxu1 %vm1480_vm10, %v1473_v17  ;;  %v1420_v11 = vpack.c.bf16 %v905_v10, %v904_v8  ;;  %v909_v16 = vld [vmem:[%s1917_s9 + $0x38] sm:$0xff] }
 0x2ef   :  { %1395 = vmatprep.subr.bf16.mxu1 %v1479_v52  ;;  %v1426_v18 = vpack.c.bf16 %v909_v16, %v908_v15 }
 0x2f2   :  { %1397 = vmatpush3.bf16.msra.mxu1 %v1396_v23  ;;  %v913_v23 = vld [vmem:[%s1917_s9 + $0x58] sm:$0xff] }
 0x2f3   :  { %1398 = vmatprep.subr.bf16.mxu1 %v1479_v52  ;;  %v1432_v24 = vpack.c.bf16 %v913_v23, %v912_v22 }
 0x2f6   :  { %1400 = vmatpush3.bf16.msra.mxu1 %v1399_v31 }
 0x2f7   :  { %1401 = vmatprep.subr.bf16.mxu1 %v1479_v52 }
 0x2fa   :  { %1403 = vmatpush3.bf16.msra.mxu1 %v1402_v35 }
 0x2fb   :  { %1416 = vmatprep.subr.bf16.mxu1 %v1479_v52 }
 0x3c0   :  { %v1208_v36 = vpop.f32.mrb[0].mxu1 }
 0x3c1   :  { %v537_v37 = vpop.f32.mrb[1].mxu1 }
 0x3c2   :  { %v546_v39 = vmax.f32 %v537_v37, %v1208_v36 }
 0x3c4   :  { %v554_v40 = vadd.f32 %v1022_v38, %v546_v39 }
 0x3c6   :  { %v555_v41 = vmax.f32 %v554_v40, 0.0 }
 0x3c8   :  { %556 = vst.msk [vmem:[#allocation4] sm:$0xff] %vm423_vm8, %v555_v41 }
 0x3cf   :  { %v567_v47 = vld [vmem:[#allocation4 + $0x1] ss:$4 sm:$0x3]  ;;  %v724_v48 = vld [vmem:[#allocation4 + $0x2] ss:$4 sm:$0x3] }
 0x3d0   :  { %1226 = vmatmul.mubr.msk.f32.vlgmr.msra.gmra.mrb[8].mxu0 %vm423_vm8, %v567_v47  ;;  %1264 = vmatmul.mubr.msk.f32.vlgmr.msra.gmra.mrb[2].mxu1 %vm423_vm8, %v724_v48  ;;  %v557_v62 = vld [vmem:[#allocation4] ss:$4 sm:$0x3]  ;;  %v809_v5 = vld [vmem:[#allocation4 + $0x3] ss:$4 sm:$0x3] }
 0x3d1   :  { %1382 = vmatpush3.bf16.msra.mxu0 %v1381_v44  ;;  %1244 = vmatprep.mubr.msk.f32.mxu0 %vm1480_vm10, %v1473_v17  ;;  %v1052_v44 = vld [vmem:[%s1918_s10] ss:$0 sm:$0xff] }
 0x3d2   :  { %1383 = vmatprep.subr.bf16.mxu0 %v1479_v52  ;;  %1317 = vmatprep.mubr.msk.f32.mxu1 %vm1480_vm10, %v1473_v17 }
 0x3d3   :  { %1418 = vmatpush3.bf16.msra.mxu1 %v1417_v9 }
 0x3d4   :  { %1419 = vmatprep.subr.bf16.mxu1 %v1479_v52 }
 0x3d5   :  { %1385 = vmatpush3.bf16.msra.mxu0 %v1384_v49 }
 0x3d6   :  { %1386 = vmatprep.subr.bf16.mxu0 %v1479_v52 }
 0x3d7   :  { %1421 = vmatpush3.bf16.msra.mxu1 %v1420_v11 }
 0x3d8   :  { %1422 = vmatprep.subr.bf16.mxu1 %v1479_v52 }
 0x3d9   :  { %1388 = vmatpush3.bf16.msra.mxu0 %v1387_v53 }
 0x3da   :  { %1389 = vmatprep.subr.bf16.mxu0 %v1479_v52 }
 0x3db   :  { %1424 = vmatpush3.bf16.msra.mxu1 %v1423_v14 }
 0x3dc   :  { %1425 = vmatprep.subr.bf16.mxu1 %v1479_v52 }
 0x3dd   :  { %1391 = vmatpush3.bf16.msra.mxu0 %v1390_v56 }
 0x3de   :  { %1404 = vmatprep.subr.bf16.mxu0 %v1479_v52 }
 0x3df   :  { %1427 = vmatpush3.bf16.msra.mxu1 %v1426_v18 }
 0x3e0   :  { %1245 = vmatmul.mubr.msk.f32.vlgmr.msra.gmra.mrb[10].mxu0 %vm423_vm8, %v557_v62  ;;  %1428 = vmatprep.subr.bf16.mxu1 %v1479_v52 }
 0x3e1   :  { %1406 = vmatpush3.bf16.msra.mxu0 %v1405_v59  ;;  %1282 = vmatprep.mubr.msk.f32.mxu0 %vm1480_vm10, %v1473_v17  ;;  %v1049_v17 = vld [vmem:[%s1915_s7 + $0xf8] sm:$0xff] }
 0x3e2   :  { %1407 = vmatprep.subr.bf16.mxu0 %v1479_v52  ;;  %v1414_v4 = vpack.c.bf16 %v1049_v17, %v1048_v3 }
 0x3e3   :  { %1430 = vmatpush3.bf16.msra.mxu1 %v1429_v21 }
 0x3e4   :  { %1431 = vmatprep.subr.bf16.mxu1 %v1479_v52 }
 0x3e5   :  { %1409 = vmatpush3.bf16.msra.mxu0 %v1408_v63 }
 0x3e6   :  { %1410 = vmatprep.subr.bf16.mxu0 %v1479_v52 }
 0x3e7   :  { %1433 = vmatpush3.bf16.msra.mxu1 %v1432_v24 }
 0x3e8   :  { %1434 = vmatprep.subr.bf16.mxu1 %v1479_v52 }
 0x3e9   :  { %1412 = vmatpush3.bf16.msra.mxu0 %v1411_v2 }
 0x3ea   :  { %1413 = vmatprep.subr.bf16.mxu0 %v1479_v52 }
 0x3eb   :  { %1436 = vmatpush3.bf16.msra.mxu1 %v1435_v27 }
 0x3ec   :  { %1437 = vmatprep.subr.bf16.mxu1 %v1479_v52  ;;  %v1051_v52 = vld [vmem:[%s1916_s8] ss:$0 sm:$0xff] }
 0x3ed   :  { %1415 = vmatpush3.bf16.msra.mxu0 %v1414_v4 }
 0x3ef   :  { %1439 = vmatpush3.bf16.msra.mxu1 %v1438_v30 }
 0x3f0   :  { %1283 = vmatmul.mubr.msk.f32.vlgmr.msra.gmra.mrb[12].mxu0 %vm423_vm8, %v809_v5 }
 0x4a3   :  { %v646_v31 = vpop.f32.mrb[8].mxu0  ;;  %v803_v32 = vpop.f32.mrb[2].mxu1 }
 0x4a4   :  { %v1227_v33 = vpop.f32.mrb[9].mxu0  ;;  %v1265_v34 = vpop.f32.mrb[3].mxu1 }
 0x4b3   :  { %v719_v35 = vpop.f32.mrb[10].mxu0 }
 0x4b4   :  { %v720_v36 = vadd.f32 %v719_v35, %v646_v31  ;;  %v1246_v37 = vpop.f32.mrb[11].mxu0 }
 0x4b6   :  { %v807_v38 = vadd.f32 %v803_v32, %v720_v36 }
 0x4c3   :  { %v888_v39 = vpop.f32.mrb[12].mxu0 }
 0x4c4   :  { %v892_v40 = vadd.f32 %v888_v39, %v807_v38  ;;  %v1284_v41 = vpop.f32.mrb[13].mxu0 }
 0x4c6   :  { %v900_v42 = vadd.f32 %v1051_v52, %v892_v40 }
 0x4c8   :  { %v901_v43 = vmax.f32 %v900_v42, 0.0 }
 0x4ca   :  { %1318 = vmatmul.mubr.f32.vlgmr.msra.gmra.mrb[4].mxu1 %v901_v43 }
 0x59d   :  { %v991_v45 = vpop.f32.mrb[4].mxu1 }
 0x59e   :  { %v992_v46 = vadd.f32 %v1052_v44, %v991_v45  ;;  %v1319_v47 = vpop.f32.mrb[5].mxu1 }
 0x5a0   :  { %995 = vst [vmem:[#allocation5] sm:$0x3] %v992_v46 }
 0x5a1   :  { %1460 = shalt.err (!%p1457_p4)
}
 0x5a2   :  { %s1461_s5 = scalar_lea.hbm %s1919_s11, 32 }
 0x5a3   :  { %p1462_p5 = scmp.ne.s32.totalorder %s1919_s11, %s1461_s5  ;;  %p1465_p6 = scmp.lt.u32.totalorder %s1461_s5, %s1919_s11 }
 0x5a5   :  { %p1467_p7 = pnand %p1465_p6, %p1462_p5 }
 0x5a7   :  { %1470 = shalt.err (!%p1467_p7)
}
 0x5a8   :  { %1005 = dma.vmem_to_hbm [thread:$0]  %s1003_s18, 32, %s1919_s11, [#allocation6]  }
 0x5a9   :  { %1471 = dma.done.wait [#allocation6], 32  }
 0x5aa   :  { %1472 = vsyncadd [#allocation6], 4294967264 }
 0x5ab   :  { %1009 = vsyncpa [#allocation6], 1 }

</bundles_post_ra>
